<compile_context>
chip_gen: v6e
topology: v6e:2x2x1
jax: 0.10.0
libtpu: 0.0.40
codegen_flags: <defaults>
</compile_context>

<pallas_src>
import functools

import jax
import jax.numpy as jnp
import numpy as np
from jax.experimental import pallas as pl
from jax.experimental.pallas import tpu as pltpu


def _round_up(x, m):
    return (x + m - 1) // m * m


def mymodel_kernel(pooled_ref, wp_ref, bp_ref,
                   w1_ref, b1_ref, w2_ref, b2_ref, w3_ref, b3_ref,
                   out_ref):
    # pooled_ref: [TB, P] bf16  (seq-mean folded through the linear patch embed)
    # wp: [P, Dp] bf16    bp: [1, Dp]  f32
    # w1: [Dp, H1p]       b1: [1, H1p]
    # w2: [H1p, H2p]      b2: [1, H2p]
    # w3: [H2p, Lp]       b3: [1, Lp]
    # out_ref: [TB, Lp] f32
    h = jnp.dot(pooled_ref[...], wp_ref[...],
                preferred_element_type=jnp.float32) + bp_ref[...]

    # classifier MLP (Dropout = identity at inference)
    x = jnp.dot(h.astype(w1_ref.dtype), w1_ref[...],
                preferred_element_type=jnp.float32) + b1_ref[...]
    x = jnp.maximum(x, 0.0)
    x = jnp.dot(x.astype(w2_ref.dtype), w2_ref[...],
                preferred_element_type=jnp.float32) + b2_ref[...]
    x = jnp.maximum(x, 0.0)
    logits = jnp.dot(x.astype(w3_ref.dtype), w3_ref[...],
                     preferred_element_type=jnp.float32) + b3_ref[...]

    out_ref[...] = logits.astype(out_ref.dtype)


@functools.partial(jax.jit, static_argnames=("patch_size",))
def mymodel_forward(pixel_values, params, *, patch_size=4):
    """pixel_values: [B, C, H, W] float32 (NCHW, like PyTorch)."""
    B, C, H, W = pixel_values.shape
    p = patch_size
    assert H % p == 0 and W % p == 0, "H, W must be divisible by patch_size"
    P = C * p * p

    wp, bp, w1, b1, w2, b2, w3, b3 = params
    D, H1, H2, L = wp.shape[1], w1.shape[1], w2.shape[1], w3.shape[1]
    assert wp.shape[0] == P and w1.shape[0] == D
    assert w2.shape[0] == H1 and w3.shape[0] == H2

    # mean over seq folded through patchify + linear embed (exact for the
    # linear stand-in): reads pixel_values exactly once, no [B,S,P] intermediate.
    pooled = (pixel_values
              .reshape(B, C, H // p, p, W // p, p)
              .mean(axis=(2, 4))            # [B, C, p, p]
              .reshape(B, P))               # same feature order as patchify

    # Lane-dense padded widths on the (cheap) weight side only.
    D_pad = _round_up(D, 128)
    H1_pad = _round_up(H1, 128)
    H2_pad = _round_up(H2, 128)
    L_pad = _round_up(L, 128)

    # Batch tiling: >=2 batch tiles whenever possible so the "parallel" axis
    # can be split across v7x's two TensorCores; TB capped at 256 for big B.
    B8 = _round_up(B, 8)
    if B8 <= 8:
        TB, B_pad = B8, B8
    elif B8 <= 512:
        TB = _round_up(B8 // 2, 8)
        B_pad = 2 * TB
    else:
        TB = 256
        B_pad = _round_up(B8, 256)

    def pad2(x, r, c):
        return jnp.pad(x, ((0, r - x.shape[0]), (0, c - x.shape[1])))

    pooled_p = pad2(pooled, B_pad, P).astype(jnp.bfloat16)   # P kept natural
    wp_p = pad2(wp, P, D_pad).astype(jnp.bfloat16)
    bp_p = pad2(bp, 1, D_pad).astype(jnp.float32)
    w1_p = pad2(w1, D_pad, H1_pad).astype(jnp.bfloat16)
    b1_p = pad2(b1, 1, H1_pad).astype(jnp.float32)
    w2_p = pad2(w2, H1_pad, H2_pad).astype(jnp.bfloat16)
    b2_p = pad2(b2, 1, H2_pad).astype(jnp.float32)
    w3_p = pad2(w3, H2_pad, L_pad).astype(jnp.bfloat16)
    b3_p = pad2(b3, 1, L_pad).astype(jnp.float32)

    const = lambda b: (0, 0)
    grid = (B_pad // TB,)

    flops = 2 * B_pad * (P * D_pad + D_pad * H1_pad + H1_pad * H2_pad + H2_pad * L_pad)
    bytes_accessed = (pooled_p.size * 2
                      + (wp_p.size + w1_p.size + w2_p.size + w3_p.size) * 2
                      + (bp_p.size + b1_p.size + b2_p.size + b3_p.size) * 4
                      + B_pad * L_pad * 4)

    out = pl.pallas_call(
        mymodel_kernel,
        out_shape=jax.ShapeDtypeStruct((B_pad, L_pad), jnp.float32),
        grid_spec=pltpu.PrefetchScalarGridSpec(
            num_scalar_prefetch=0,
            grid=grid,
            in_specs=[
                pl.BlockSpec((TB, P), lambda b: (b, 0)),      # pooled features
                pl.BlockSpec((P, D_pad), const),              # wp
                pl.BlockSpec((1, D_pad), const),              # bp
                pl.BlockSpec((D_pad, H1_pad), const),         # w1
                pl.BlockSpec((1, H1_pad), const),             # b1
                pl.BlockSpec((H1_pad, H2_pad), const),        # w2
                pl.BlockSpec((1, H2_pad), const),              # b2
                pl.BlockSpec((H2_pad, L_pad), const),         # w3
                pl.BlockSpec((1, L_pad), const),               # b3
            ],
            out_specs=pl.BlockSpec((TB, L_pad), lambda b: (b, 0)),
        ),
        compiler_params=pltpu.CompilerParams(
            dimension_semantics=("parallel",)),
        cost_estimate=pl.CostEstimate(
            flops=flops, transcendentals=0, bytes_accessed=bytes_accessed),
    )(pooled_p, wp_p, bp_p, w1_p, b1_p, w2_p, b2_p, w3_p, b3_p)

    return out[:B, :L]


def mymodel_ref(pixel_values, params, *, patch_size=4):
    """Pure-JAX f32 reference: per-token embed -> mean over seq -> classifier."""
    B, C, H, W = pixel_values.shape
    p = patch_size
    S = (H // p) * (W // p)
    patches = (pixel_values
               .reshape(B, C, H // p, p, W // p, p)
               .transpose(0, 2, 4, 1, 3, 5)
               .reshape(B, S, -1))
    wp, bp, w1, b1, w2, b2, w3, b3 = params
    hidden = jnp.einsum("bsp,pd->bsd", patches, wp) + bp
    pooled = hidden.mean(axis=1)
    x = jnp.maximum(pooled @ w1 + b1, 0.0)
    x = jnp.maximum(x @ w2 + b2, 0.0)
    return x @ w3 + b3


def init_params(key, *, in_ch, patch_size, hidden_size, num_labels):
    p_dim = in_ch * patch_size * patch_size
    ks = jax.random.split(key, 8)

    def lin(kw, kb, fan_in, fan_out):
        w = jax.random.normal(kw, (fan_in, fan_out), jnp.float32) / jnp.sqrt(fan_in)
        b = jax.random.normal(kb, (1, fan_out), jnp.float32) * 0.05
        return w, b

    wp, bp = lin(ks[0], ks[1], p_dim, hidden_size)
    w1, b1 = lin(ks[2], ks[3], hidden_size, 512)
    w2, b2 = lin(ks[4], ks[5], 512, 256)
    w3, b3 = lin(ks[6], ks[7], 256, num_labels)
    return (wp, bp, w1, b1, w2, b2, w3, b3)


if __name__ == "__main__":
    B, C, H, W = 2, 4, 16, 16
    patch_size = 4
    hidden_size = 32
    num_labels = 10

    key = jax.random.PRNGKey(0)
    k_x, k_p = jax.random.split(key)
    pixel_values = jax.random.normal(k_x, (B, C, H, W), jnp.float32)
    params = init_params(k_p, in_ch=C, patch_size=patch_size,
                         hidden_size=hidden_size, num_labels=num_labels)

    logits = mymodel_forward(pixel_values, params, patch_size=patch_size)
    logits = jax.block_until_ready(logits)
    assert logits.shape == (B, num_labels)

    ref = jax.block_until_ready(
        mymodel_ref(pixel_values, params, patch_size=patch_size))
    max_err = float(jnp.max(jnp.abs(logits - ref)))
    assert np.isfinite(max_err) and max_err < 0.25, f"max_err={max_err}"

    print("KERNEL_OK")
</pallas_src>

<mosaic_0001>
module attributes {stable_mosaic.version = 11 : i64} {
  func.func @mymodel_kernel(%arg0: i32, %arg1: memref<8x64xbf16, #tpu.memory_space<vmem>>, %arg2: memref<64x128xbf16, #tpu.memory_space<vmem>>, %arg3: memref<1x128xf32, #tpu.memory_space<vmem>>, %arg4: memref<128x512xbf16, #tpu.memory_space<vmem>>, %arg5: memref<1x512xf32, #tpu.memory_space<vmem>>, %arg6: memref<512x256xbf16, #tpu.memory_space<vmem>>, %arg7: memref<1x256xf32, #tpu.memory_space<vmem>>, %arg8: memref<256x128xbf16, #tpu.memory_space<vmem>>, %arg9: memref<1x128xf32, #tpu.memory_space<vmem>>, %arg10: memref<8x128xf32, #tpu.memory_space<vmem>>) attributes {dimension_semantics = [#tpu.dimension_semantics<parallel>], iteration_bounds = array<i64: 1>, scalar_prefetch = 0 : i64, scratch_operands = 0 : i64, tpu.core_type = #tpu.core_type<tc>, window_params = [{transform_indices = @transform_0, window_bounds = array<i64: 8, 64>}, {pipeline_mode = #tpu.pipeline_mode<synchronous>, transform_indices = @transform_1, window_bounds = array<i64: 64, 128>}, {pipeline_mode = #tpu.pipeline_mode<synchronous>, transform_indices = @transform_2, window_bounds = array<i64: 1, 128>}, {pipeline_mode = #tpu.pipeline_mode<synchronous>, transform_indices = @transform_3, window_bounds = array<i64: 128, 512>}, {pipeline_mode = #tpu.pipeline_mode<synchronous>, transform_indices = @transform_4, window_bounds = array<i64: 1, 512>}, {pipeline_mode = #tpu.pipeline_mode<synchronous>, transform_indices = @transform_5, window_bounds = array<i64: 512, 256>}, {pipeline_mode = #tpu.pipeline_mode<synchronous>, transform_indices = @transform_6, window_bounds = array<i64: 1, 256>}, {pipeline_mode = #tpu.pipeline_mode<synchronous>, transform_indices = @transform_7, window_bounds = array<i64: 256, 128>}, {pipeline_mode = #tpu.pipeline_mode<synchronous>, transform_indices = @transform_8, window_bounds = array<i64: 1, 128>}, {transform_indices = @transform_9, window_bounds = array<i64: 8, 128>}]} {
    %c0 = arith.constant 0 : index
    %c0_0 = arith.constant 0 : index
    %0 = vector.load %arg1[%c0, %c0_0] : memref<8x64xbf16, #tpu.memory_space<vmem>>, vector<8x64xbf16>
    %c0_1 = arith.constant 0 : index
    %c0_2 = arith.constant 0 : index
    %1 = vector.load %arg2[%c0_1, %c0_2] : memref<64x128xbf16, #tpu.memory_space<vmem>>, vector<64x128xbf16>
    %cst = arith.constant dense<0.000000e+00> : vector<8x128xf32>
    %2 = tpu.matmul %0, %1, %cst {dimension_numbers = #tpu.dot_dimension_numbers<[1], [0], [0], [1], [0, 0, 1, 1], [], []>} : vector<8x64xbf16>, vector<64x128xbf16>, vector<8x128xf32> -> vector<8x128xf32>
    %c0_3 = arith.constant 0 : index
    %c0_4 = arith.constant 0 : index
    %3 = vector.load %arg3[%c0_3, %c0_4] : memref<1x128xf32, #tpu.memory_space<vmem>>, vector<1x128xf32>
    %4 = vector.broadcast %3 : vector<1x128xf32> to vector<8x128xf32>
    %5 = arith.addf %2, %4 : vector<8x128xf32>
    %6 = arith.truncf %5 : vector<8x128xf32> to vector<8x128xbf16>
    %c0_5 = arith.constant 0 : index
    %c0_6 = arith.constant 0 : index
    %7 = vector.load %arg4[%c0_5, %c0_6] : memref<128x512xbf16, #tpu.memory_space<vmem>>, vector<128x512xbf16>
    %cst_7 = arith.constant dense<0.000000e+00> : vector<8x512xf32>
    %8 = tpu.matmul %6, %7, %cst_7 {dimension_numbers = #tpu.dot_dimension_numbers<[1], [0], [0], [1], [0, 0, 1, 1], [], []>} : vector<8x128xbf16>, vector<128x512xbf16>, vector<8x512xf32> -> vector<8x512xf32>
    %c0_8 = arith.constant 0 : index
    %c0_9 = arith.constant 0 : index
    %9 = vector.load %arg5[%c0_8, %c0_9] : memref<1x512xf32, #tpu.memory_space<vmem>>, vector<1x512xf32>
    %10 = vector.broadcast %9 : vector<1x512xf32> to vector<8x512xf32>
    %11 = arith.addf %8, %10 : vector<8x512xf32>
    %cst_10 = arith.constant 0.000000e+00 : f32
    %12 = vector.broadcast %cst_10 : f32 to vector<8x512xf32>
    %13 = arith.maximumf %11, %12 : vector<8x512xf32>
    %14 = arith.truncf %13 : vector<8x512xf32> to vector<8x512xbf16>
    %c0_11 = arith.constant 0 : index
    %c0_12 = arith.constant 0 : index
    %15 = vector.load %arg6[%c0_11, %c0_12] : memref<512x256xbf16, #tpu.memory_space<vmem>>, vector<512x256xbf16>
    %cst_13 = arith.constant dense<0.000000e+00> : vector<8x256xf32>
    %16 = tpu.matmul %14, %15, %cst_13 {dimension_numbers = #tpu.dot_dimension_numbers<[1], [0], [0], [1], [0, 0, 1, 1], [], []>} : vector<8x512xbf16>, vector<512x256xbf16>, vector<8x256xf32> -> vector<8x256xf32>
    %c0_14 = arith.constant 0 : index
    %c0_15 = arith.constant 0 : index
    %17 = vector.load %arg7[%c0_14, %c0_15] : memref<1x256xf32, #tpu.memory_space<vmem>>, vector<1x256xf32>
    %18 = vector.broadcast %17 : vector<1x256xf32> to vector<8x256xf32>
    %19 = arith.addf %16, %18 : vector<8x256xf32>
    %cst_16 = arith.constant 0.000000e+00 : f32
    %20 = vector.broadcast %cst_16 : f32 to vector<8x256xf32>
    %21 = arith.maximumf %19, %20 : vector<8x256xf32>
    %22 = arith.truncf %21 : vector<8x256xf32> to vector<8x256xbf16>
    %c0_17 = arith.constant 0 : index
    %c0_18 = arith.constant 0 : index
    %23 = vector.load %arg8[%c0_17, %c0_18] : memref<256x128xbf16, #tpu.memory_space<vmem>>, vector<256x128xbf16>
    %cst_19 = arith.constant dense<0.000000e+00> : vector<8x128xf32>
    %24 = tpu.matmul %22, %23, %cst_19 {dimension_numbers = #tpu.dot_dimension_numbers<[1], [0], [0], [1], [0, 0, 1, 1], [], []>} : vector<8x256xbf16>, vector<256x128xbf16>, vector<8x128xf32> -> vector<8x128xf32>
    %c0_20 = arith.constant 0 : index
    %c0_21 = arith.constant 0 : index
    %25 = vector.load %arg9[%c0_20, %c0_21] : memref<1x128xf32, #tpu.memory_space<vmem>>, vector<1x128xf32>
    %26 = vector.broadcast %25 : vector<1x128xf32> to vector<8x128xf32>
    %27 = arith.addf %24, %26 : vector<8x128xf32>
    %c0_22 = arith.constant 0 : index
    %c0_23 = arith.constant 0 : index
    %28 = vector.load %arg10[%c0_22, %c0_23] : memref<8x128xf32, #tpu.memory_space<vmem>>, vector<8x128xf32>
    tpu.vector_store %arg10[%c0_22, %c0_23], %27 {strides = array<i32>} : memref<8x128xf32, #tpu.memory_space<vmem>>, vector<8x128xf32>,
    return
  }
  func.func @transform_0(%arg0: i32) -> (i32, i32) {
    %c0_i32 = arith.constant 0 : i32
    %c0_i32_0 = arith.constant 0 : i32
    return %arg0, %c0_i32 : i32, i32
  }
  func.func @transform_1(%arg0: i32) -> (i32, i32) {
    %c0_i32 = arith.constant 0 : i32
    %c0_i32_0 = arith.constant 0 : i32
    %c0_i32_1 = arith.constant 0 : i32
    return %c0_i32, %c0_i32_0 : i32, i32
  }
  func.func @transform_2(%arg0: i32) -> (i32, i32) {
    %c0_i32 = arith.constant 0 : i32
    %c0_i32_0 = arith.constant 0 : i32
    %c0_i32_1 = arith.constant 0 : i32
    return %c0_i32, %c0_i32_0 : i32, i32
  }
  func.func @transform_3(%arg0: i32) -> (i32, i32) {
    %c0_i32 = arith.constant 0 : i32
    %c0_i32_0 = arith.constant 0 : i32
    %c0_i32_1 = arith.constant 0 : i32
    return %c0_i32, %c0_i32_0 : i32, i32
  }
  func.func @transform_4(%arg0: i32) -> (i32, i32) {
    %c0_i32 = arith.constant 0 : i32
    %c0_i32_0 = arith.constant 0 : i32
    %c0_i32_1 = arith.constant 0 : i32
    return %c0_i32, %c0_i32_0 : i32, i32
  }
  func.func @transform_5(%arg0: i32) -> (i32, i32) {
    %c0_i32 = arith.constant 0 : i32
    %c0_i32_0 = arith.constant 0 : i32
    %c0_i32_1 = arith.constant 0 : i32
    return %c0_i32, %c0_i32_0 : i32, i32
  }
  func.func @transform_6(%arg0: i32) -> (i32, i32) {
    %c0_i32 = arith.constant 0 : i32
    %c0_i32_0 = arith.constant 0 : i32
    %c0_i32_1 = arith.constant 0 : i32
    return %c0_i32, %c0_i32_0 : i32, i32
  }
  func.func @transform_7(%arg0: i32) -> (i32, i32) {
    %c0_i32 = arith.constant 0 : i32
    %c0_i32_0 = arith.constant 0 : i32
    %c0_i32_1 = arith.constant 0 : i32
    return %c0_i32, %c0_i32_0 : i32, i32
  }
  func.func @transform_8(%arg0: i32) -> (i32, i32) {
    %c0_i32 = arith.constant 0 : i32
    %c0_i32_0 = arith.constant 0 : i32
    %c0_i32_1 = arith.constant 0 : i32
    return %c0_i32, %c0_i32_0 : i32, i32
  }
  func.func @transform_9(%arg0: i32) -> (i32, i32) {
    %c0_i32 = arith.constant 0 : i32
    %c0_i32_0 = arith.constant 0 : i32
    return %arg0, %c0_i32 : i32, i32
  }
}

</mosaic_0001>

<bundles_post_ra>
// kernel: mymodel_forward.1
= control target key start
LH: loop header
LB: loop body
LE: loop exit
PB: predicated region body
PF: predicated region fallthrough
CT: control target
= control target key end

     0   :  { %v1409_v0 = vmov 0.0   ;;  %vm1410_vm0 = vmmov 0   ;;  %vm73_vm1 = vcmask 523264   ;;  %v1411_v38 = vmov 0   ;;  %s1842_s1 = inlined_call_operand.vmem [shape: bf16[64,128], index: 1, kind: input, shape index: {}]   ;;  %s1843_s3 = inlined_call_operand.vmem [shape: bf16[128,512], index: 3, kind: input, shape index: {}]   ;;  %s1844_s0 = inlined_call_operand.vmem [shape: bf16[8,64], index: 0, kind: input, shape index: {}]   ;;  %s1845_s5 = inlined_call_operand.vmem [shape: bf16[512,256], index: 5, kind: input, shape index: {}]   ;;  %s1846_s2 = inlined_call_operand.vmem [shape: f32[1,128], index: 2, kind: input, shape index: {}]   ;;  %s1847_s7 = inlined_call_operand.vmem [shape: bf16[256,128], index: 7, kind: input, shape index: {}]   ;;  %s1848_s4 = inlined_call_operand.vmem [shape: f32[1,512], index: 4, kind: input, shape index: {}]   ;;  %s1849_s6 = inlined_call_operand.vmem [shape: f32[1,256], index: 6, kind: input, shape index: {}]   ;;  %s1850_s8 = inlined_call_operand.vmem [shape: f32[1,128], index: 8, kind: input, shape index: {}]   ;;  %s1851_s9 = inlined_call_operand.vmem [shape: f32[8,128], index: 9, kind: output, shape index: {}]  }
   0x1   :  { %1230 = vmatprep.subr.bf16.mxu0 %v1409_v0  ;;  %v1245_v1 = vld [vmem:[%s1842_s1 + $0x18] sm:$0xff]   ;;  %1238 = vmatprep.mubr.msk.bf16.mxu0 %vm1410_vm0, %v1409_v0  ;;  %v1246_v2 = vld [vmem:[%s1842_s1 + $0x10] sm:$0xff]   ;;  %v1247_v4 = vld [vmem:[%s1842_s1 + $0x8] sm:$0xff]  }
   0x2   :  { %1231 = vmatpush3.bf16.msra.mxu0 %v1245_v1  ;;  %v1249_v3 = vld [vmem:[%s1843_s3 + $0xe4] ss:$16 sps:$4 sm:$0xff]   ;;  %v1254_v5 = vld [vmem:[%s1843_s3 + $0xe0] ss:$16 sps:$4 sm:$0xff]   ;;  %v1253_v10 = vld [vmem:[%s1843_s3 + $0xec] ss:$16 sps:$4 sm:$0xff]   ;;  %364 = vmatprep.mubr.bf16.mxu1 %v1411_v38 }
   0x3   :  { %1232 = vmatprep.subr.bf16.mxu0 %v1409_v0  ;;  %332 = vmatprep.subr.bf16.mxu1 %v1249_v3  ;;  %v1255_v6 = vld [vmem:[%s1843_s3 + $0xc4] ss:$16 sps:$4 sm:$0xff]   ;;  %v1260_v8 = vld [vmem:[%s1843_s3 + $0xc0] ss:$16 sps:$4 sm:$0xff]   ;;  %v1251_v14 = vld [vmem:[%s1843_s3 + $0xe8] ss:$16 sps:$4 sm:$0xff]  }
   0x4   :  { %333 = vmatpush1.bf16.msra.mxu1 %v1254_v5  ;;  %v1248_v7 = vld [vmem:[%s1842_s1] sm:$0xff]   ;;  %v1259_v15 = vld [vmem:[%s1843_s3 + $0xcc] ss:$16 sps:$4 sm:$0xff]   ;;  %v1257_v18 = vld [vmem:[%s1843_s3 + $0xc8] ss:$16 sps:$4 sm:$0xff]  }
   0x5   :  { %334 = vmatprep.subr.bf16.mxu1 %v1255_v6  ;;  %v1261_v9 = vld [vmem:[%s1843_s3 + $0xa4] ss:$16 sps:$4 sm:$0xff]   ;;  %v1266_v11 = vld [vmem:[%s1843_s3 + $0xa0] ss:$16 sps:$4 sm:$0xff]   ;;  %v1265_v19 = vld [vmem:[%s1843_s3 + $0xac] ss:$16 sps:$4 sm:$0xff]  }
   0x6   :  { %1233 = vmatpush3.bf16.msra.mxu0 %v1246_v2  ;;  %v1267_v12 = vld [vmem:[%s1843_s3 + $0x84] ss:$16 sps:$4 sm:$0xff]   ;;  %v33_v13 = vld [vmem:[%s1844_s0] sm:$0xf]  ;;  %v1263_v22 = vld [vmem:[%s1843_s3 + $0xa8] ss:$16 sps:$4 sm:$0xff]  }
   0x7   :  { %1234 = vmatprep.subr.bf16.mxu0 %v1409_v0  ;;  %v1272_v16 = vld [vmem:[%s1843_s3 + $0x80] ss:$16 sps:$4 sm:$0xff]   ;;  %v1273_v17 = vld [vmem:[%s1843_s3 + $0x64] ss:$16 sps:$4 sm:$0xff]   ;;  %v1271_v23 = vld [vmem:[%s1843_s3 + $0x8c] ss:$16 sps:$4 sm:$0xff]  }
   0x8   :  { %335 = vmatpush1.bf16.msra.mxu1 %v1260_v8  ;;  %v1278_v20 = vld [vmem:[%s1843_s3 + $0x60] ss:$16 sps:$4 sm:$0xff]   ;;  %v1279_v21 = vld [vmem:[%s1843_s3 + $0x44] ss:$16 sps:$4 sm:$0xff]   ;;  %v1269_v26 = vld [vmem:[%s1843_s3 + $0x88] ss:$16 sps:$4 sm:$0xff]  }
   0x9   :  { %336 = vmatprep.subr.bf16.mxu1 %v1261_v9  ;;  %v1284_v24 = vld [vmem:[%s1843_s3 + $0x40] ss:$16 sps:$4 sm:$0xff]   ;;  %v1285_v25 = vld [vmem:[%s1843_s3 + $0x24] ss:$16 sps:$4 sm:$0xff]   ;;  %v1277_v27 = vld [vmem:[%s1843_s3 + $0x6c] ss:$16 sps:$4 sm:$0xff]  }
   0xa   :  { %1235 = vmatpush3.bf16.msra.mxu0 %v1247_v4  ;;  %v1290_v28 = vld [vmem:[%s1843_s3 + $0x20] ss:$16 sps:$4 sm:$0xff]   ;;  %v1275_v29 = vld [vmem:[%s1843_s3 + $0x68] ss:$16 sps:$4 sm:$0xff]   ;;  %v1283_v30 = vld [vmem:[%s1843_s3 + $0x4c] ss:$16 sps:$4 sm:$0xff]  }
   0xb   :  { %1236 = vmatprep.subr.bf16.mxu0 %v1409_v0  ;;  %v1281_v31 = vld [vmem:[%s1843_s3 + $0x48] ss:$16 sps:$4 sm:$0xff]   ;;  %v1289_v32 = vld [vmem:[%s1843_s3 + $0x2c] ss:$16 sps:$4 sm:$0xff]   ;;  %v1291_v34 = vld [vmem:[%s1843_s3 + $0x4] ss:$16 sps:$4 sm:$0xff]  }
   0xc   :  { %337 = vmatpush1.bf16.msra.mxu1 %v1266_v11  ;;  %v1287_v33 = vld [vmem:[%s1843_s3 + $0x28] ss:$16 sps:$4 sm:$0xff]   ;;  %v1295_v35 = vld [vmem:[%s1843_s3 + $0xc] ss:$16 sps:$4 sm:$0xff]   ;;  %v1296_v37 = vld [vmem:[%s1843_s3] ss:$16 sps:$4 sm:$0xff]  }
   0xd   :  { %338 = vmatprep.subr.bf16.mxu1 %v1267_v12  ;;  %v1293_v36 = vld [vmem:[%s1843_s3 + $0x8] ss:$16 sps:$4 sm:$0xff]   ;;  %v1299_v39 = vld [vmem:[%s1845_s5 + $0x74] ss:$8 sps:$4 sm:$0xff]   ;;  %v1084_v41 = vld [vmem:[%s1846_s2] ss:$0 sm:$0xff] }
   0xe   :  { %1237 = vmatpush3.bf16.msra.mxu0 %v1248_v7  ;;  %v1302_v40 = vld [vmem:[%s1845_s5 + $0x174] ss:$8 sps:$4 sm:$0xff]   ;;  %v1297_v45 = vld [vmem:[%s1845_s5 + $0x70] ss:$8 sps:$4 sm:$0xff]   ;;  %v1305_v48 = vld [vmem:[%s1845_s5 + $0x64] ss:$8 sps:$4 sm:$0xff]  }
   0xf   :  { %373 = vmatprep.subr.bf16.mxu0 %v1253_v10  ;;  %v1300_v46 = vld [vmem:[%s1845_s5 + $0x170] ss:$8 sps:$4 sm:$0xff]   ;;  %v1308_v49 = vld [vmem:[%s1845_s5 + $0x164] ss:$8 sps:$4 sm:$0xff]   ;;  %v1303_v52 = vld [vmem:[%s1845_s5 + $0x60] ss:$8 sps:$4 sm:$0xff]  }
  0x10   :  { %339 = vmatpush1.bf16.msra.mxu1 %v1272_v16  ;;  %v1306_v53 = vld [vmem:[%s1845_s5 + $0x160] ss:$8 sps:$4 sm:$0xff]   ;;  %v1311_v54 = vld [vmem:[%s1845_s5 + $0x54] ss:$8 sps:$4 sm:$0xff]   ;;  %v1309_v56 = vld [vmem:[%s1845_s5 + $0x50] ss:$8 sps:$4 sm:$0xff]  }
  0x11   :  { %1239 = vmatmul.mubr.msk.bf16.vlgmr.msra.gmra.mxu0 %vm73_vm1, %v33_v13  ;;  %340 = vmatprep.subr.bf16.mxu1 %v1273_v17  ;;  %v1314_v55 = vld [vmem:[%s1845_s5 + $0x154] ss:$8 sps:$4 sm:$0xff]   ;;  %v1312_v57 = vld [vmem:[%s1845_s5 + $0x150] ss:$8 sps:$4 sm:$0xff]   ;;  %v1317_v58 = vld [vmem:[%s1845_s5 + $0x44] ss:$8 sps:$4 sm:$0xff]  }
  0x12   :  { %374 = vmatpush1.bf16.msra.mxu0 %v1251_v14  ;;  %405 = vmatprep.mubr.bf16.mxu0 %v1411_v38  ;;  %v1320_v59 = vld [vmem:[%s1845_s5 + $0x144] ss:$8 sps:$4 sm:$0xff]   ;;  %v1315_v60 = vld [vmem:[%s1845_s5 + $0x40] ss:$8 sps:$4 sm:$0xff]   ;;  %v1323_v62 = vld [vmem:[%s1845_s5 + $0x34] ss:$8 sps:$4 sm:$0xff]  }
  0x13   :  { %375 = vmatprep.subr.bf16.mxu0 %v1259_v15  ;;  %v1318_v61 = vld [vmem:[%s1845_s5 + $0x140] ss:$8 sps:$4 sm:$0xff]   ;;  %v1326_v63 = vld [vmem:[%s1845_s5 + $0x134] ss:$8 sps:$4 sm:$0xff]   ;;  %v1321_v0 = vld [vmem:[%s1845_s5 + $0x30] ss:$8 sps:$4 sm:$0xff]  }
  0x14   :  { %341 = vmatpush1.bf16.msra.mxu1 %v1278_v20  ;;  %v1324_v1 = vld [vmem:[%s1845_s5 + $0x130] ss:$8 sps:$4 sm:$0xff]   ;;  %v1329_v2 = vld [vmem:[%s1845_s5 + $0x24] ss:$8 sps:$4 sm:$0xff]   ;;  %v1327_v4 = vld [vmem:[%s1845_s5 + $0x20] ss:$8 sps:$4 sm:$0xff]  }
  0x15   :  { %342 = vmatprep.subr.bf16.mxu1 %v1279_v21  ;;  %v1332_v3 = vld [vmem:[%s1845_s5 + $0x124] ss:$8 sps:$4 sm:$0xff]   ;;  %v1330_v5 = vld [vmem:[%s1845_s5 + $0x120] ss:$8 sps:$4 sm:$0xff]   ;;  %v1335_v6 = vld [vmem:[%s1845_s5 + $0x14] ss:$8 sps:$4 sm:$0xff]  }
  0x16   :  { %376 = vmatpush1.bf16.msra.mxu0 %v1257_v18  ;;  %v1338_v7 = vld [vmem:[%s1845_s5 + $0x114] ss:$8 sps:$4 sm:$0xff]   ;;  %v1333_v8 = vld [vmem:[%s1845_s5 + $0x10] ss:$8 sps:$4 sm:$0xff]   ;;  %v1341_v10 = vld [vmem:[%s1845_s5 + $0x4] ss:$8 sps:$4 sm:$0xff]  }
  0x17   :  { %377 = vmatprep.subr.bf16.mxu0 %v1265_v19  ;;  %v1336_v9 = vld [vmem:[%s1845_s5 + $0x110] ss:$8 sps:$4 sm:$0xff]   ;;  %v1344_v11 = vld [vmem:[%s1845_s5 + $0x104] ss:$8 sps:$4 sm:$0xff]   ;;  %v1339_v12 = vld [vmem:[%s1845_s5] ss:$8 sps:$4 sm:$0xff]  }
  0x18   :  { %343 = vmatpush1.bf16.msra.mxu1 %v1284_v24  ;;  %v1342_v13 = vld [vmem:[%s1845_s5 + $0x100] ss:$8 sps:$4 sm:$0xff]   ;;  %v1347_v14 = vld [vmem:[%s1845_s5 + $0xf4] ss:$8 sps:$4 sm:$0xff]   ;;  %v1345_v16 = vld [vmem:[%s1845_s5 + $0xf0] ss:$8 sps:$4 sm:$0xff]  }
  0x19   :  { %344 = vmatprep.subr.bf16.mxu1 %v1285_v25  ;;  %v1350_v15 = vld [vmem:[%s1845_s5 + $0x1f4] ss:$8 sps:$4 sm:$0xff]   ;;  %v1348_v17 = vld [vmem:[%s1845_s5 + $0x1f0] ss:$8 sps:$4 sm:$0xff]   ;;  %v1353_v18 = vld [vmem:[%s1845_s5 + $0xe4] ss:$8 sps:$4 sm:$0xff]  }
  0x1a   :  { %378 = vmatpush1.bf16.msra.mxu0 %v1263_v22  ;;  %v1356_v19 = vld [vmem:[%s1845_s5 + $0x1e4] ss:$8 sps:$4 sm:$0xff]   ;;  %v1351_v20 = vld [vmem:[%s1845_s5 + $0xe0] ss:$8 sps:$4 sm:$0xff]   ;;  %v1359_v22 = vld [vmem:[%s1845_s5 + $0xd4] ss:$8 sps:$4 sm:$0xff]  }
  0x1b   :  { %379 = vmatprep.subr.bf16.mxu0 %v1271_v23  ;;  %v1354_v21 = vld [vmem:[%s1845_s5 + $0x1e0] ss:$8 sps:$4 sm:$0xff]   ;;  %v1362_v23 = vld [vmem:[%s1845_s5 + $0x1d4] ss:$8 sps:$4 sm:$0xff]   ;;  %v1357_v24 = vld [vmem:[%s1845_s5 + $0xd0] ss:$8 sps:$4 sm:$0xff]  }
  0x1c   :  { %345 = vmatpush1.bf16.msra.mxu1 %v1290_v28  ;;  %v1360_v25 = vld [vmem:[%s1845_s5 + $0x1d0] ss:$8 sps:$4 sm:$0xff]   ;;  %v1363_v28 = vld [vmem:[%s1845_s5 + $0xc0] ss:$8 sps:$4 sm:$0xff]   ;;  %v1383_v38 = vld [vmem:[%s1845_s5 + $0x94] ss:$8 sps:$4 sm:$0xff]  }
  0x1d   :  { %346 = vmatprep.subr.bf16.mxu1 %v1291_v34  ;;  %v1377_v34 = vld [vmem:[%s1845_s5 + $0xa4] ss:$8 sps:$4 sm:$0xff]  }
  0x1e   :  { %380 = vmatpush1.bf16.msra.mxu0 %v1269_v26  ;;  %v1365_v26 = vld [vmem:[%s1845_s5 + $0xc4] ss:$8 sps:$4 sm:$0xff]  }
  0x1f   :  { %381 = vmatprep.subr.bf16.mxu0 %v1277_v27  ;;  %v1368_v27 = vld [vmem:[%s1845_s5 + $0x1c4] ss:$8 sps:$4 sm:$0xff]  }
  0x20   :  { %347 = vmatpush1.bf16.msra.mxu1 %v1296_v37  ;;  %v1378_v37 = vld [vmem:[%s1845_s5 + $0x1a0] ss:$8 sps:$4 sm:$0xff]  }
  0x21   :  { %818 = vmatprep.subr.bf16.mxu1 %v1299_v39  ;;  %v1386_v39 = vld [vmem:[%s1845_s5 + $0x194] ss:$8 sps:$4 sm:$0xff]  }
  0x22   :  { %382 = vmatpush1.bf16.msra.mxu0 %v1275_v29  ;;  %v1366_v29 = vld [vmem:[%s1845_s5 + $0x1c0] ss:$8 sps:$4 sm:$0xff]  }
  0x23   :  { %383 = vmatprep.subr.bf16.mxu0 %v1283_v30  ;;  %v1371_v30 = vld [vmem:[%s1845_s5 + $0xb4] ss:$8 sps:$4 sm:$0xff]  }
  0x26   :  { %384 = vmatpush1.bf16.msra.mxu0 %v1281_v31  ;;  %v1374_v31 = vld [vmem:[%s1845_s5 + $0x1b4] ss:$8 sps:$4 sm:$0xff]  }
  0x27   :  { %385 = vmatprep.subr.bf16.mxu0 %v1289_v32  ;;  %v1369_v32 = vld [vmem:[%s1845_s5 + $0xb0] ss:$8 sps:$4 sm:$0xff]  }
  0x2a   :  { %386 = vmatpush1.bf16.msra.mxu0 %v1287_v33  ;;  %v1372_v33 = vld [vmem:[%s1845_s5 + $0x1b0] ss:$8 sps:$4 sm:$0xff]  }
  0x2b   :  { %387 = vmatprep.subr.bf16.mxu0 %v1295_v35  ;;  %v1380_v35 = vld [vmem:[%s1845_s5 + $0x1a4] ss:$8 sps:$4 sm:$0xff]  }
  0x2e   :  { %388 = vmatpush1.bf16.msra.mxu0 %v1293_v36  ;;  %v1375_v36 = vld [vmem:[%s1845_s5 + $0xa0] ss:$8 sps:$4 sm:$0xff]  }
  0x2f   :  { %859 = vmatprep.subr.bf16.mxu0 %v1302_v40  ;;  %v1381_v40 = vld [vmem:[%s1845_s5 + $0x90] ss:$8 sps:$4 sm:$0xff]  }
  0xd1   :  { %v111_v42 = vpop.f32.mrf.mxu0 }
  0xd2   :  { %v112_v43 = vadd.f32 %v1084_v41, %v111_v42  ;;  %v1384_v41 = vld [vmem:[%s1845_s5 + $0x190] ss:$8 sps:$4 sm:$0xff]   ;;  %v1389_v42 = vld [vmem:[%s1845_s5 + $0x84] ss:$8 sps:$4 sm:$0xff]  }
  0xd3   :  { %v1240_v44 = vpop.f32.mrf.mxu0 }
  0xd4   :  { %v117_v47 = vpack.c.bf16 %v112_v43, %v112_v43  ;;  %v1392_v43 = vld [vmem:[%s1845_s5 + $0x184] ss:$8 sps:$4 sm:$0xff]   ;;  %v1387_v44 = vld [vmem:[%s1845_s5 + $0x80] ss:$8 sps:$4 sm:$0xff]  }
  0xd5   :  { %v114_v50 = vpop.f32.mrf.mxu0 }
  0xd6   :  { %365 = vmatmul.mubr.bf16.vlgmr.msra.gmra.mxu1 %v117_v47  ;;  %406 = vmatmul.mubr.bf16.vlgmr.msra.gmra.mxu0 %v117_v47  ;;  %v152_v47 = vlaneseq }
  0xd7   :  { %v1241_v51 = vpop.f32.mrf.mxu0  ;;  %819 = vmatpush1.bf16.msra.mxu1 %v1297_v45  ;;  %860 = vmatpush1.bf16.msra.mxu0 %v1300_v46  ;;  %v1390_v45 = vld [vmem:[%s1845_s5 + $0x180] ss:$8 sps:$4 sm:$0xff]   ;;  %v1393_v46 = vld [vmem:[%s1847_s7 + $0x78] sm:$0xff]  }
  0xd8   :  { %820 = vmatprep.subr.bf16.mxu1 %v1305_v48  ;;  %861 = vmatprep.subr.bf16.mxu0 %v1308_v49  ;;  %v1771_v48 = vshrl.u32 %v152_v47, 7  ;;  %v150_v51 = vld [vmem:[%s1848_s4] sm:$0xf] }
  0xda   :  { %v154_v49 = vsub.s32 0, %v1771_v48  ;;  %v162_v50 = vsub.s32 2, %v1771_v48 }
  0xdb   :  { %821 = vmatpush1.bf16.msra.mxu1 %v1303_v52  ;;  %862 = vmatpush1.bf16.msra.mxu0 %v1306_v53  ;;  %v158_v52 = vsub.s32 1, %v1771_v48  ;;  %v166_v53 = vsub.s32 3, %v1771_v48 }
  0xdc   :  { %822 = vmatprep.subr.bf16.mxu1 %v1311_v54  ;;  %863 = vmatprep.subr.bf16.mxu0 %v1314_v55  ;;  %v155_v54 = vrot.slane %v150_v51, %v154_v49  ;;  %v163_v55 = vrot.slane %v150_v51, %v162_v50 }
  0xdf   :  { %823 = vmatpush1.bf16.msra.mxu1 %v1309_v56  ;;  %864 = vmatpush1.bf16.msra.mxu0 %v1312_v57  ;;  %v159_v56 = vrot.slane %v150_v51, %v158_v52  ;;  %v167_v57 = vrot.slane %v150_v51, %v166_v53 }
  0xe0   :  { %824 = vmatprep.subr.bf16.mxu1 %v1317_v58  ;;  %865 = vmatprep.subr.bf16.mxu0 %v1320_v59 }
  0xe3   :  { %825 = vmatpush1.bf16.msra.mxu1 %v1315_v60  ;;  %866 = vmatpush1.bf16.msra.mxu0 %v1318_v61 }
  0xe4   :  { %826 = vmatprep.subr.bf16.mxu1 %v1323_v62  ;;  %867 = vmatprep.subr.bf16.mxu0 %v1326_v63 }
  0xe7   :  { %827 = vmatpush1.bf16.msra.mxu1 %v1321_v0  ;;  %868 = vmatpush1.bf16.msra.mxu0 %v1324_v1 }
  0xe8   :  { %828 = vmatprep.subr.bf16.mxu1 %v1329_v2  ;;  %869 = vmatprep.subr.bf16.mxu0 %v1332_v3 }
  0xeb   :  { %829 = vmatpush1.bf16.msra.mxu1 %v1327_v4  ;;  %870 = vmatpush1.bf16.msra.mxu0 %v1330_v5 }
  0xec   :  { %830 = vmatprep.subr.bf16.mxu1 %v1335_v6  ;;  %871 = vmatprep.subr.bf16.mxu0 %v1338_v7 }
  0xef   :  { %831 = vmatpush1.bf16.msra.mxu1 %v1333_v8  ;;  %872 = vmatpush1.bf16.msra.mxu0 %v1336_v9 }
  0xf0   :  { %832 = vmatprep.subr.bf16.mxu1 %v1341_v10  ;;  %873 = vmatprep.subr.bf16.mxu0 %v1344_v11 }
  0xf3   :  { %833 = vmatpush1.bf16.msra.mxu1 %v1339_v12  ;;  %874 = vmatpush1.bf16.msra.mxu0 %v1342_v13  ;;  %v1394_v12 = vld [vmem:[%s1847_s7 + $0x38] sm:$0xff]  }
  0xf4   :  { %834 = vmatprep.subr.bf16.mxu1 %v1347_v14  ;;  %875 = vmatprep.subr.bf16.mxu0 %v1350_v15  ;;  %v1395_v15 = vld [vmem:[%s1847_s7 + $0x70] sm:$0xff]  }
  0xf7   :  { %835 = vmatpush2.bf16.msra.mxu1 %v1345_v16  ;;  %876 = vmatpush2.bf16.msra.mxu0 %v1348_v17  ;;  %v1396_v16 = vld [vmem:[%s1847_s7 + $0x30] sm:$0xff]   ;;  %v1397_v17 = vld [vmem:[%s1847_s7 + $0x68] sm:$0xff]  }
  0xf8   :  { %836 = vmatprep.subr.bf16.mxu1 %v1353_v18  ;;  %877 = vmatprep.subr.bf16.mxu0 %v1356_v19  ;;  %v1398_v18 = vld [vmem:[%s1847_s7 + $0x28] sm:$0xff]   ;;  %v1399_v19 = vld [vmem:[%s1847_s7 + $0x60] sm:$0xff]  }
  0xfb   :  { %837 = vmatpush2.bf16.msra.mxu1 %v1351_v20  ;;  %878 = vmatpush2.bf16.msra.mxu0 %v1354_v21  ;;  %v1400_v20 = vld [vmem:[%s1847_s7 + $0x20] sm:$0xff]   ;;  %v1401_v21 = vld [vmem:[%s1847_s7 + $0x58] sm:$0xff]  }
  0xfc   :  { %838 = vmatprep.subr.bf16.mxu1 %v1359_v22  ;;  %879 = vmatprep.subr.bf16.mxu0 %v1362_v23  ;;  %v1402_v22 = vld [vmem:[%s1847_s7 + $0x18] sm:$0xff]   ;;  %v1403_v23 = vld [vmem:[%s1847_s7 + $0x50] sm:$0xff]  }
  0xff   :  { %839 = vmatpush2.bf16.msra.mxu1 %v1357_v24  ;;  %880 = vmatpush2.bf16.msra.mxu0 %v1360_v25  ;;  %v1404_v24 = vld [vmem:[%s1847_s7 + $0x10] sm:$0xff]   ;;  %v1405_v25 = vld [vmem:[%s1847_s7 + $0x48] sm:$0xff]  }
 0x100   :  { %840 = vmatprep.subr.bf16.mxu1 %v1365_v26  ;;  %881 = vmatprep.subr.bf16.mxu0 %v1368_v27  ;;  %v1406_v26 = vld [vmem:[%s1847_s7 + $0x8] sm:$0xff]   ;;  %v1407_v27 = vld [vmem:[%s1847_s7 + $0x40] sm:$0xff]  }
 0x103   :  { %841 = vmatpush2.bf16.msra.mxu1 %v1363_v28  ;;  %882 = vmatpush2.bf16.msra.mxu0 %v1366_v29  ;;  %v1408_v28 = vld [vmem:[%s1847_s7] sm:$0xff]  }
 0x104   :  { %842 = vmatprep.subr.bf16.mxu1 %v1371_v30  ;;  %883 = vmatprep.subr.bf16.mxu0 %v1374_v31  ;;  %v486_v29 = vld [vmem:[%s1849_s6] sm:$0x3] }
 0x105   :  { %v491_v30 = vrot.slane %v486_v29, %v154_v49  ;;  %v495_v31 = vrot.slane %v486_v29, %v158_v52  ;;  %v1186_v49 = vld [vmem:[%s1850_s8] ss:$0 sm:$0xff] }
 0x107   :  { %843 = vmatpush2.bf16.msra.mxu1 %v1369_v32  ;;  %884 = vmatpush2.bf16.msra.mxu0 %v1372_v33 }
 0x108   :  { %844 = vmatprep.subr.bf16.mxu1 %v1377_v34  ;;  %885 = vmatprep.subr.bf16.mxu0 %v1380_v35 }
 0x10b   :  { %845 = vmatpush2.bf16.msra.mxu1 %v1375_v36  ;;  %886 = vmatpush2.bf16.msra.mxu0 %v1378_v37 }
 0x10c   :  { %846 = vmatprep.subr.bf16.mxu1 %v1383_v38  ;;  %887 = vmatprep.subr.bf16.mxu0 %v1386_v39 }
 0x10f   :  { %847 = vmatpush2.bf16.msra.mxu1 %v1381_v40  ;;  %888 = vmatpush2.bf16.msra.mxu0 %v1384_v41 }
 0x110   :  { %848 = vmatprep.subr.bf16.mxu1 %v1389_v42  ;;  %889 = vmatprep.subr.bf16.mxu0 %v1392_v43 }
 0x113   :  { %849 = vmatpush2.bf16.msra.mxu1 %v1387_v44  ;;  %890 = vmatpush2.bf16.msra.mxu0 %v1390_v45 }
 0x114   :  { %1208 = vmatprep.subr.bf16.mxu1 %v1393_v46 }
 0x196   :  { %v366_v58 = vpop.f32.mrf.mxu1  ;;  %v407_v59 = vpop.f32.mrf.mxu0 }
 0x197   :  { %v367_v60 = vadd.f32 %v366_v58, %v155_v54  ;;  %v408_v61 = vadd.f32 %v407_v59, %v163_v55 }
 0x198   :  { %v368_v62 = vpop.f32.mrf.mxu1  ;;  %v409_v63 = vpop.f32.mrf.mxu0 }
 0x199   :  { %v369_v0 = vadd.f32 %v368_v62, %v159_v56  ;;  %v410_v1 = vadd.f32 %v409_v63, %v167_v57  ;;  %v414_v2 = vmax.f32 %v367_v60, 0.0  ;;  %v416_v3 = vmax.f32 %v408_v61, 0.0 }
 0x19a   :  { %v370_v4 = vpop.f32.mrf.mxu1  ;;  %v411_v5 = vpop.f32.mrf.mxu0 }
 0x19b   :  { %v415_v6 = vmax.f32 %v369_v0, 0.0  ;;  %v417_v7 = vmax.f32 %v410_v1, 0.0  ;;  %v418_v13 = vpack.c.bf16 %v414_v2, %v414_v2  ;;  %v420_v14 = vpack.c.bf16 %v416_v3, %v416_v3 }
 0x19c   :  { %v371_v8 = vpop.f32.mrf.mxu1  ;;  %v412_v9 = vpop.f32.mrf.mxu0 }
 0x19d   :  { %v419_v10 = vpack.c.bf16 %v415_v6, %v415_v6  ;;  %v421_v11 = vpack.c.bf16 %v417_v7, %v417_v7 }
 0x19f   :  { %850 = vmatprep.mubr.bf16.mxu1 %v419_v10  ;;  %891 = vmatprep.mubr.bf16.mxu0 %v421_v11 }
 0x1a0   :  { %851 = vmatmul.mubr.bf16.vlgmr.msra.gmra.mxu1 %v418_v13  ;;  %892 = vmatmul.mubr.bf16.vlgmr.msra.gmra.mxu0 %v420_v14 }
 0x1a1   :  { %1209 = vmatpush3.bf16.msra.mxu1 %v1394_v12 }
 0x1a2   :  { %1210 = vmatprep.subr.bf16.mxu1 %v1395_v15 }
 0x1a5   :  { %1211 = vmatpush3.bf16.msra.mxu1 %v1396_v16 }
 0x1a6   :  { %1212 = vmatprep.subr.bf16.mxu1 %v1397_v17 }
 0x1a9   :  { %1213 = vmatpush3.bf16.msra.mxu1 %v1398_v18 }
 0x1aa   :  { %1214 = vmatprep.subr.bf16.mxu1 %v1399_v19 }
 0x1ad   :  { %1215 = vmatpush3.bf16.msra.mxu1 %v1400_v20 }
 0x1ae   :  { %1216 = vmatprep.subr.bf16.mxu1 %v1401_v21 }
 0x1b1   :  { %1217 = vmatpush3.bf16.msra.mxu1 %v1402_v22 }
 0x1b2   :  { %1218 = vmatprep.subr.bf16.mxu1 %v1403_v23 }
 0x1b5   :  { %1219 = vmatpush3.bf16.msra.mxu1 %v1404_v24 }
 0x1b6   :  { %1220 = vmatprep.subr.bf16.mxu1 %v1405_v25 }
 0x1b9   :  { %1221 = vmatpush3.bf16.msra.mxu1 %v1406_v26 }
 0x1ba   :  { %1222 = vmatprep.subr.bf16.mxu1 %v1407_v27 }
 0x1bd   :  { %1223 = vmatpush3.bf16.msra.mxu1 %v1408_v28 }
 0x260   :  { %v852_v32 = vpop.f32.mrf.mxu1  ;;  %v893_v33 = vpop.f32.mrf.mxu0 }
 0x261   :  { %v853_v34 = vadd.f32 %v852_v32, %v491_v30 }
 0x262   :  { %v854_v35 = vpop.f32.mrf.mxu1  ;;  %v895_v36 = vpop.f32.mrf.mxu0 }
 0x263   :  { %v894_v37 = vadd.f32 %v893_v33, %v853_v34  ;;  %v855_v38 = vadd.f32 %v854_v35, %v495_v31 }
 0x264   :  { %v856_v39 = vpop.f32.mrf.mxu1  ;;  %v897_v40 = vpop.f32.mrf.mxu0 }
 0x265   :  { %v896_v41 = vadd.f32 %v895_v36, %v855_v38  ;;  %v900_v42 = vmax.f32 %v894_v37, 0.0 }
 0x266   :  { %v857_v43 = vpop.f32.mrf.mxu1  ;;  %v898_v44 = vpop.f32.mrf.mxu0 }
 0x267   :  { %v901_v45 = vmax.f32 %v896_v41, 0.0  ;;  %v902_v47 = vpack.c.bf16 %v900_v42, %v900_v42 }
 0x269   :  { %v903_v46 = vpack.c.bf16 %v901_v45, %v901_v45 }
 0x26b   :  { %1071 = vmatprep.mubr.bf16.mxu1 %v903_v46 }
 0x26c   :  { %1072 = vmatmul.mubr.bf16.vlgmr.msra.gmra.mxu1 %v902_v47 }
 0x32c   :  { %v1224_v48 = vpop.f32.mrf.mxu1 }
 0x32e   :  { %v1225_v50 = vpop.f32.mrf.mxu1 }
 0x32f   :  { %v1226_v51 = vadd.f32 %v1225_v50, %v1224_v48 }
 0x330   :  { %v1227_v52 = vpop.f32.mrf.mxu1 }
 0x331   :  { %v1074_v53 = vadd.f32 %v1226_v51, %v1186_v49 }
 0x332   :  { %v1228_v54 = vpop.f32.mrf.mxu1 }
 0x333   :  { %1079 = vst [vmem:[%s1851_s9] sm:$0xff] %v1074_v53 }

</bundles_post_ra>
